<compile_context>
chip_gen: v7x
topology: tpu7x:2x2x1
jax: 0.10.0
libtpu: 0.0.40
codegen_flags: <defaults>
</compile_context>

<pallas_src>
import jax
import jax.numpy as jnp
from jax import lax
from jax.experimental import pallas as pl
from jax.experimental.pallas import tpu as pltpu


def _round_up(v, m):
    return (v + m - 1) // m * m


def _make_kernel(has_bias, use_acc, single_k):
    """FOSSV linear tile kernel.

    Per (i, j, k) grid step (all dots contract the last dims, i.e. A @ B.T):
      part  = x_tile @ w_tile.T                      (main weight, MXU)
      part += (x_tile @ As_tile.T) @ B_tile.T        (rank-r adapter; scale is
                                                      pre-folded into As)
    accumulated in f32 across k (directly in o_ref when it is f32, else in an
    f32 VMEM scratch), with the bias fused into the init / epilogue.
    """

    def kernel(x_ref, w_ref, a_ref, b_ref, *rest):
        idx = 0
        bias_ref = None
        if has_bias:
            bias_ref = rest[idx]
            idx += 1
        o_ref = rest[idx]
        idx += 1
        acc_ref = rest[idx] if use_acc else None
        tgt = acc_ref if use_acc else o_ref

        dn = (((1,), (1,)), ((), ()))   # contract last dim of both operands

        part = lax.dot_general(x_ref[...], w_ref[...], dn,
                               preferred_element_type=jnp.float32)
        xa = lax.dot_general(x_ref[...], a_ref[...], dn,
                             preferred_element_type=jnp.float32)
        part = part + lax.dot_general(xa.astype(b_ref.dtype), b_ref[...], dn,
                                      preferred_element_type=jnp.float32)

        if single_k:
            if has_bias:
                part = part + bias_ref[...].astype(jnp.float32)
            o_ref[...] = part.astype(o_ref.dtype)
        else:
            k = pl.program_id(2)

            @pl.when(k == 0)
            def _():
                if has_bias:
                    tgt[...] = jnp.broadcast_to(
                        bias_ref[...], tgt.shape).astype(tgt.dtype)
                else:
                    tgt[...] = jnp.zeros_like(tgt)

            tgt[...] += part.astype(tgt.dtype)

            if use_acc:
                @pl.when(k == pl.num_programs(2) - 1)
                def _():
                    o_ref[...] = acc_ref[...].astype(o_ref.dtype)

    return kernel


def fossv_linear(x, weight, fossv_A, fossv_S, fossv_B, scale, bias=None, *,
                 tm=None, tn=None, tk=None, compute_dtype=None, auto_k=True):
    """Matches FOSSV Linear.forward (r>0, unmerged, warmup phase, dropout=0).

    x: (..., in) -> (..., out); weight: (out, in); fossv_A: (r, in);
    fossv_S: (r,); fossv_B: (out, r); bias: (out,) or None.
    Fast path: compute_dtype=jnp.bfloat16 (f32 accumulation, x.dtype output).
    tm must be a multiple of the compute dtype's sublane (8 f32 / 16 bf16);
    tn, tk must be multiples of 128.
    """
    out_features, in_features = weight.shape
    r = fossv_A.shape[0]
    lead_shape = x.shape[:-1]
    out_dtype = x.dtype
    has_bias = bias is not None

    x2d = x.reshape(-1, in_features)
    M, K, N = x2d.shape[0], in_features, out_features

    if compute_dtype is None:
        compute_dtype = x.dtype      # bf16 in -> bf16 MXU path automatically
    compute_dtype = jnp.dtype(compute_dtype)
    isz = compute_dtype.itemsize
    out_isz = jnp.dtype(out_dtype).itemsize

    # ---- generation-aware tile defaults / VMEM budget -----------------------
    try:
        phys_vmem = pltpu.get_tpu_info().vmem_capacity_bytes
    except Exception:                 # unknown: assume v7x-class 64 MiB / TC
        phys_vmem = 64 << 20
    big_vmem = phys_vmem >= (100 << 20)        # v5e / v6e: 128 MiB physical
    if tm is None:
        tm = 512
    if tn is None:
        tn = 1024
    if tk is None:
        tk = 1024 if big_vmem else 512         # v7x: re-derived for 64 MiB/TC
    vmem_limit = (96 << 20) if big_vmem else (40 << 20)

    # ---- effective tiles (clamped to problem, dtype-aware sublane) ----------
    sub = 8 * max(1, 4 // isz)                 # 8 f32 / 16 bf16 / 32 int8-fp8
    tm_eff = min(tm, _round_up(M, sub))
    tn_eff = min(tn, _round_up(N, 128))
    tk_eff = min(tk, _round_up(K, 128))

    # Keep >=2 parallel output tiles when one tile covers the whole problem
    # (v7x: 2 TensorCores shard the "parallel" grid axes).
    Mp0, Np0 = _round_up(M, sub), _round_up(N, 128)
    if Mp0 <= tm_eff and Np0 <= tn_eff and Np0 % 256 == 0:
        tn_eff = Np0 // 2

    # Collapse the K grid when both double-buffered K-strips fit comfortably:
    # one k step means no accumulator revisits and a straight store to o_ref.
    if auto_k:
        Kp0 = _round_up(K, 128)
        if 2 * (tm_eff + tn_eff) * Kp0 * isz <= vmem_limit // 3:
            tk_eff = Kp0

    Mp = _round_up(M, tm_eff)
    Np = _round_up(N, tn_eff)
    Kp = _round_up(K, tk_eff)
    grid = (Mp // tm_eff, Np // tn_eff, Kp // tk_eff)
    nk = grid[2]

    # ---- operands (weight stays (out, in): no transpose pass over HBM) ------
    r_pad = max(8, _round_up(r, 8))
    x2d = x2d.astype(compute_dtype)
    w2d = weight.astype(compute_dtype)
    # Fold scale and S into A once: As = diag(S * scale) @ A, shape (r, in).
    as2d = (fossv_A * (fossv_S * scale)[:, None]).astype(compute_dtype)
    b2d = fossv_B.astype(compute_dtype)

    if (Mp, Kp) != (M, K):
        x2d = jnp.pad(x2d, ((0, Mp - M), (0, Kp - K)))
    if (Np, Kp) != (N, K):
        w2d = jnp.pad(w2d, ((0, Np - N), (0, Kp - K)))
    if (r_pad, Kp) != (r, K):
        as2d = jnp.pad(as2d, ((0, r_pad - r), (0, Kp - K)))
    if (Np, r_pad) != (N, r):
        b2d = jnp.pad(b2d, ((0, Np - N), (0, r_pad - r)))

    in_specs = [
        pl.BlockSpec((tm_eff, tk_eff), lambda i, j, k: (i, k)),   # x
        pl.BlockSpec((tn_eff, tk_eff), lambda i, j, k: (j, k)),   # W (out,in)
        pl.BlockSpec((r_pad, tk_eff), lambda i, j, k: (0, k)),    # As (r,in)
        pl.BlockSpec((tn_eff, r_pad), lambda i, j, k: (j, 0)),    # B (out,r)
    ]
    args = [x2d, w2d, as2d, b2d]
    if has_bias:
        bias2d = bias.reshape(1, -1).astype(jnp.float32)
        if Np != N:
            bias2d = jnp.pad(bias2d, ((0, 0), (0, Np - N)))
        in_specs.append(pl.BlockSpec((1, tn_eff), lambda i, j, k: (0, j)))
        args.append(bias2d)

    use_acc = (nk > 1) and (jnp.dtype(out_dtype) != jnp.dtype(jnp.float32))
    scratch = [pltpu.VMEM((tm_eff, tn_eff), jnp.float32)] if use_acc else []

    cost = pl.CostEstimate(
        flops=int(2 * M * N * K + 2 * M * K * r_pad + 2 * M * r_pad * N),
        transcendentals=0,
        bytes_accessed=int((M * K + N * K + r_pad * (K + N)) * isz
                           + M * N * out_isz))

    out_p = pl.pallas_call(
        _make_kernel(has_bias, use_acc, nk == 1),
        out_shape=jax.ShapeDtypeStruct((Mp, Np), out_dtype),
        grid_spec=pltpu.PrefetchScalarGridSpec(
            num_scalar_prefetch=0,
            grid=grid,
            in_specs=in_specs,
            out_specs=pl.BlockSpec((tm_eff, tn_eff), lambda i, j, k: (i, j)),
            scratch_shapes=scratch),
        compiler_params=pltpu.CompilerParams(
            dimension_semantics=("parallel", "parallel", "arbitrary"),
            vmem_limit_bytes=vmem_limit),
        cost_estimate=cost,
    )(*args)

    out = out_p[:M, :N]
    return out.reshape(*lead_shape, out_features)


def reference(x, weight, fossv_A, fossv_S, fossv_B, scale, bias=None):
    fossv_delta = (fossv_B @ jnp.diag(fossv_S) @ fossv_A) * scale
    y = x @ weight.T + x @ fossv_delta.T
    if bias is not None:
        y = y + bias
    return y


if __name__ == "__main__":
    # TODO(synk): dropout (p > 0) and the FLAG/warmup SVD top-index branch are
    # training-time stateful control flow, not part of this forward kernel.

    # --- Test 1: small shapes consistent with the module (f32, exact) --------
    in_features, out_features, r = 32, 32, 4
    scale = 8.0 / r
    kx, kw, ka, ks, kb = jax.random.split(jax.random.PRNGKey(0), 5)
    x = jax.random.normal(kx, (2, 8, in_features), dtype=jnp.float32)
    weight = jax.random.normal(kw, (out_features, in_features), jnp.float32) * 0.1
    fossv_A = jax.random.normal(ka, (r, in_features), jnp.float32) * 0.1
    fossv_S = jax.random.normal(ks, (r,), jnp.float32)
    fossv_B = jax.random.normal(kb, (out_features, r), jnp.float32) * 0.1

    y = fossv_linear(x, weight, fossv_A, fossv_S, fossv_B, scale)
    jax.block_until_ready(y)
    y_ref = reference(x, weight, fossv_A, fossv_S, fossv_B, scale)
    assert jnp.allclose(y, y_ref, atol=1e-4, rtol=1e-3), "f32 small mismatch"

    # --- Test 2: multi-tile grid, f32 output accumulated directly in o_ref ---
    in2, out2, r2 = 320, 192, 8
    scale2 = 16.0 / r2
    k1, k2, k3, k4, k5 = jax.random.split(jax.random.PRNGKey(1), 5)
    x2 = jax.random.normal(k1, (3, 40, in2), dtype=jnp.float32)
    w2 = jax.random.normal(k2, (out2, in2), jnp.float32) * 0.05
    a2 = jax.random.normal(k3, (r2, in2), jnp.float32) * 0.05
    s2 = jax.random.normal(k4, (r2,), jnp.float32)
    b2 = jax.random.normal(k5, (out2, r2), jnp.float32) * 0.05
    y2 = fossv_linear(x2, w2, a2, s2, b2, scale2,
                      tm=64, tn=128, tk=128, auto_k=False)
    jax.block_until_ready(y2)
    y2_ref = reference(x2, w2, a2, s2, b2, scale2)
    assert jnp.allclose(y2, y2_ref, atol=2e-3, rtol=2e-3), "tiled mismatch"

    # --- Test 3: bf16 fast compute path (f32 accumulation, f32 output) -------
    y3 = fossv_linear(x, weight, fossv_A, fossv_S, fossv_B, scale,
                      compute_dtype=jnp.bfloat16)
    jax.block_until_ready(y3)
    assert jnp.allclose(y3, y_ref, atol=3e-2, rtol=3e-2), "bf16 mismatch"

    # --- Test 4: bf16 in/out, multi-k (f32 acc scratch) + fused bias ----------
    in4, out4, r4 = 320, 256, 8
    scale4 = 16.0 / r4
    q1, q2, q3, q4, q5, q6 = jax.random.split(jax.random.PRNGKey(2), 6)
    x4 = jax.random.normal(q1, (2, 64, in4), jnp.float32)
    w4 = jax.random.normal(q2, (out4, in4), jnp.float32) * 0.05
    a4 = jax.random.normal(q3, (r4, in4), jnp.float32) * 0.05
    s4 = jax.random.normal(q4, (r4,), jnp.float32)
    b4 = jax.random.normal(q5, (out4, r4), jnp.float32) * 0.05
    bias4 = jax.random.normal(q6, (out4,), jnp.float32) * 0.1
    y4 = fossv_linear(x4.astype(jnp.bfloat16), w4.astype(jnp.bfloat16),
                      a4.astype(jnp.bfloat16), s4.astype(jnp.bfloat16),
                      b4.astype(jnp.bfloat16), scale4, bias=bias4,
                      tm=64, tn=128, tk=128, auto_k=False)
    jax.block_until_ready(y4)
    y4_ref = reference(x4, w4, a4, s4, b4, scale4, bias4)
    assert jnp.allclose(y4.astype(jnp.float32), y4_ref,
                        atol=6e-2, rtol=6e-2), "bf16 bias/multi-k mismatch"

    print("KERNEL_OK")
</pallas_src>

<mosaic_0001>
module attributes {stable_mosaic.version = 11 : i64} {
  func.func @kernel(%arg0: i32, %arg1: i32, %arg2: i32, %arg3: memref<16x128xf32, #tpu.memory_space<vmem>>, %arg4: memref<128x128xf32, #tpu.memory_space<vmem>>, %arg5: memref<8x128xf32, #tpu.memory_space<vmem>>, %arg6: memref<128x8xf32, #tpu.memory_space<vmem>>, %arg7: memref<16x128xf32, #tpu.memory_space<vmem>>) attributes {dimension_semantics = [#tpu.dimension_semantics<parallel>, #tpu.dimension_semantics<parallel>, #tpu.dimension_semantics<arbitrary>], iteration_bounds = array<i64: 1, 1, 1>, scalar_prefetch = 0 : i64, scratch_operands = 0 : i64, tpu.core_type = #tpu.core_type<tc>, window_params = [{transform_indices = @transform_0, window_bounds = array<i64: 16, 128>}, {transform_indices = @transform_1, window_bounds = array<i64: 128, 128>}, {transform_indices = @transform_2, window_bounds = array<i64: 8, 128>}, {transform_indices = @transform_3, window_bounds = array<i64: 128, 8>}, {transform_indices = @transform_4, window_bounds = array<i64: 16, 128>}]} {
    %c0 = arith.constant 0 : index
    %c0_0 = arith.constant 0 : index
    %0 = vector.load %arg3[%c0, %c0_0] : memref<16x128xf32, #tpu.memory_space<vmem>>, vector<16x128xf32>
    %c0_1 = arith.constant 0 : index
    %c0_2 = arith.constant 0 : index
    %1 = vector.load %arg4[%c0_1, %c0_2] : memref<128x128xf32, #tpu.memory_space<vmem>>, vector<128x128xf32>
    %cst = arith.constant dense<0.000000e+00> : vector<16x128xf32>
    %2 = tpu.matmul %0, %1, %cst {dimension_numbers = #tpu.dot_dimension_numbers<[1], [1], [0], [0], [0, 0, 1, 0], [], []>} : vector<16x128xf32>, vector<128x128xf32>, vector<16x128xf32> -> vector<16x128xf32>
    %c0_3 = arith.constant 0 : index
    %c0_4 = arith.constant 0 : index
    %3 = vector.load %arg3[%c0_3, %c0_4] : memref<16x128xf32, #tpu.memory_space<vmem>>, vector<16x128xf32>
    %c0_5 = arith.constant 0 : index
    %c0_6 = arith.constant 0 : index
    %4 = vector.load %arg5[%c0_5, %c0_6] : memref<8x128xf32, #tpu.memory_space<vmem>>, vector<8x128xf32>
    %cst_7 = arith.constant dense<0.000000e+00> : vector<16x8xf32>
    %5 = tpu.matmul %3, %4, %cst_7 {dimension_numbers = #tpu.dot_dimension_numbers<[1], [1], [0], [0], [0, 0, 1, 0], [], []>} : vector<16x128xf32>, vector<8x128xf32>, vector<16x8xf32> -> vector<16x8xf32>
    %c0_8 = arith.constant 0 : index
    %c0_9 = arith.constant 0 : index
    %6 = vector.load %arg6[%c0_8, %c0_9] : memref<128x8xf32, #tpu.memory_space<vmem>>, vector<128x8xf32>
    %cst_10 = arith.constant dense<0.000000e+00> : vector<16x128xf32>
    %7 = tpu.matmul %5, %6, %cst_10 {dimension_numbers = #tpu.dot_dimension_numbers<[1], [1], [0], [0], [0, 0, 1, 0], [], []>} : vector<16x8xf32>, vector<128x8xf32>, vector<16x128xf32> -> vector<16x128xf32>
    %8 = arith.addf %2, %7 : vector<16x128xf32>
    %c0_11 = arith.constant 0 : index
    %c0_12 = arith.constant 0 : index
    %9 = vector.load %arg7[%c0_11, %c0_12] : memref<16x128xf32, #tpu.memory_space<vmem>>, vector<16x128xf32>
    tpu.vector_store %arg7[%c0_11, %c0_12], %8 {strides = array<i32>} : memref<16x128xf32, #tpu.memory_space<vmem>>, vector<16x128xf32>,
    return
  }
  func.func @transform_0(%arg0: i32, %arg1: i32, %arg2: i32) -> (i32, i32) {
    %c0_i32 = arith.constant 0 : i32
    return %arg0, %arg2 : i32, i32
  }
  func.func @transform_1(%arg0: i32, %arg1: i32, %arg2: i32) -> (i32, i32) {
    %c0_i32 = arith.constant 0 : i32
    return %arg1, %arg2 : i32, i32
  }
  func.func @transform_2(%arg0: i32, %arg1: i32, %arg2: i32) -> (i32, i32) {
    %c0_i32 = arith.constant 0 : i32
    %c0_i32_0 = arith.constant 0 : i32
    return %c0_i32, %arg2 : i32, i32
  }
  func.func @transform_3(%arg0: i32, %arg1: i32, %arg2: i32) -> (i32, i32) {
    %c0_i32 = arith.constant 0 : i32
    %c0_i32_0 = arith.constant 0 : i32
    return %arg1, %c0_i32 : i32, i32
  }
  func.func @transform_4(%arg0: i32, %arg1: i32, %arg2: i32) -> (i32, i32) {
    %c0_i32 = arith.constant 0 : i32
    return %arg0, %arg1 : i32, i32
  }
}

</mosaic_0001>

<bundles_post_ra>
// kernel: tpu_custom_call.1
= control target key start
LH: loop header
LB: loop body
LE: loop exit
PB: predicated region body
PF: predicated region fallthrough
CT: control target
= control target key end

     0   :  { %9 = vsyncpa [#allocation3], 0  ;;  %s834_s0 = inlined_call_operand.hbm [shape: f32[16,128], index: 0, kind: input, shape index: {}]   ;;  %s835_s1 = inlined_call_operand.vmem [shape: f32[128,128], index: 1, kind: input, shape index: {}]   ;;  %s836_s2 = inlined_call_operand.vmem [shape: f32[8,128], index: 2, kind: input, shape index: {}]   ;;  %s837_s3 = inlined_call_operand.vmem [shape: f32[128,8], index: 3, kind: input, shape index: {}]   ;;  %s838_s4 = inlined_call_operand.hbm [shape: f32[16,128], index: 4, kind: output, shape index: {}]  }
   0x1   :  { %10 = vsyncpa [#allocation4], 0  ;;  %s632_s15 = smov [#allocation2]   ;;  %s584_s19 = scalar_lea.hbm %s834_s0, 256 }
   0x2   :  { %s16_s16 = sshll.u32 %s632_s15, 4  ;;  %p585_p0 = scmp.ne.s32.totalorder %s834_s0, %s584_s19  ;;  %s17_s16 = int_to_ptr.vmem [resolvable:$true] %s16_s16 }
   0x3   :  { %p588_p1 = scmp.lt.u32.totalorder %s584_s19, %s834_s0 }
   0x5   :  { %p590_p2 = pnand %p588_p1, %p585_p0 }
   0x7   :  { %593 = shalt.err (!%p590_p2)
}
   0x8   :  { %s594_s24 = scalar_lea.vmem %s17_s16, 256  ;;  %p599_p4 = scmp.lt.s32.totalorder %s17_s16, %s17_s16 }
   0x9   :  { %p595_p3 = scmp.ne.s32.totalorder %s17_s16, %s594_s24  ;;  %p600_p5 = scmp.lt.s32.totalorder %s594_s24, %s594_s24 }
   0xb   :  { %p601_p6 = por %p600_p5, %p599_p4 }
   0xd   :  { %p602_p7 = pnand %p601_p6, %p595_p3 }
   0xf   :  { %605 = shalt.err (!%p602_p7)
}
  0x10   :  { %s633_s25 = smov 128   ;;  %s634_s26 = smov 8  }
  0x11   :  { %22 = dma.hbm_to_vmem [thread:$0]  %s834_s0, 256, %s17_s16, [#allocation3], %s633_s25, %s633_s25, %s634_s26  }
  0x12   :  { %628 = dma.done.wait [#allocation3], 256  }
  0x13   :  { %629 = vsyncadd [#allocation3], 4294967040  ;;  %vm142_vm0 = vcmask 64512   ;;  %v50_v1 = vld [vmem:[%s836_s2] sm:$0xff]  ;;  %v685_v3 = vld [vmem:[#allocation2 + $0x8] sm:$0xff] }
  0x14   :  { %vm678_vm1 = vmpackc.low %vm142_vm0, %vm142_vm0  ;;  %v32_v2 = vld [vmem:[#allocation2] sm:$0xff]  ;;  %423 = vmatprep.subr.mxu0 %v50_v1  ;;  %v35_v5 = vld [vmem:[%s835_s1 + $0x8] sm:$0xff] }
  0x15   :  { %425 = vmatprep.mubr.f32.mxu0 %v32_v2  ;;  %v34_v4 = vld [vmem:[%s835_s1] sm:$0xff]  ;;  %424 = vmatpush3.xpose.msra.mxu0 %v50_v1  ;;  %v127_v8 = vld [vmem:[%s837_s3 + $0x8] sm:$0xff]  ;;  %v36_v9 = vld [vmem:[%s835_s1 + $0x10] sm:$0xff] }
  0x16   :  { %v126_v6 = vld [vmem:[%s837_s3] sm:$0xff]  ;;  %v546_v7 = vpack.c.bf16 %v35_v5, %v34_v4  ;;  %v37_v10 = vld [vmem:[%s835_s1 + $0x18] sm:$0xff]  ;;  %495 = vmatprep.mubr.f32.mxu1 %v32_v2  ;;  %v128_v13 = vld [vmem:[%s837_s3 + $0x10] sm:$0xff] }
  0x17   :  { %v498_v11 = vpack.c.bf16 %v127_v8, %v126_v6  ;;  %v550_v12 = vpack.c.bf16 %v37_v10, %v36_v9  ;;  %v129_v14 = vld [vmem:[%s837_s3 + $0x18] sm:$0xff]  ;;  %v38_v16 = vld [vmem:[%s835_s1 + $0x20] sm:$0xff]  ;;  %v39_v17 = vld [vmem:[%s835_s1 + $0x28] sm:$0xff] }
  0x18   :  { %547 = vmatprep.subr.bf16.mxu1 %v546_v7  ;;  %v504_v15 = vpack.c.bf16 %v129_v14, %v128_v13  ;;  %426 = vmatmul.mubr.f32.vlgmr.msra.gmra.mrb[0].mxu0 %v685_v3  ;;  %v130_v18 = vld [vmem:[%s837_s3 + $0x20] sm:$0xff]  ;;  %v131_v19 = vld [vmem:[%s837_s3 + $0x28] sm:$0xff]  ;;  %v554_v20 = vpack.c.bf16 %v39_v17, %v38_v16  ;;  %v40_v22 = vld [vmem:[%s835_s1 + $0x30] sm:$0xff] }
  0x19   :  { %500 = vmatprep.subr.msk.bf16.mxu0 %vm678_vm1, %v498_v11  ;;  %549 = vmatpush3.bf16.xpose.msra.mxu1 %v546_v7  ;;  %v510_v21 = vpack.c.bf16 %v131_v19, %v130_v18  ;;  %v41_v23 = vld [vmem:[%s835_s1 + $0x38] sm:$0xff]  ;;  %v132_v24 = vld [vmem:[%s837_s3 + $0x30] sm:$0xff]  ;;  %v42_v28 = vld [vmem:[%s835_s1 + $0x40] sm:$0xff] }
  0x1a   :  { %503 = vmatpush3.bf16.xpose.msk.msra.mxu0 %vm678_vm1, %v498_v11  ;;  %551 = vmatprep.subr.bf16.mxu1 %v550_v12  ;;  %v133_v25 = vld [vmem:[%s837_s3 + $0x38] sm:$0xff]  ;;  %v558_v26 = vpack.c.bf16 %v41_v23, %v40_v22  ;;  %v43_v29 = vld [vmem:[%s835_s1 + $0x48] sm:$0xff]  ;;  %v134_v30 = vld [vmem:[%s837_s3 + $0x40] sm:$0xff] }
  0x1b   :  { %506 = vmatprep.subr.msk.bf16.mxu0 %vm678_vm1, %v504_v15  ;;  %v516_v27 = vpack.c.bf16 %v133_v25, %v132_v24  ;;  %v135_v31 = vld [vmem:[%s837_s3 + $0x48] sm:$0xff]  ;;  %v562_v32 = vpack.c.bf16 %v43_v29, %v42_v28  ;;  %v44_v34 = vld [vmem:[%s835_s1 + $0x50] sm:$0xff]  ;;  %v45_v35 = vld [vmem:[%s835_s1 + $0x58] sm:$0xff] }
  0x1c   :  { %v522_v33 = vpack.c.bf16 %v135_v31, %v134_v30  ;;  %v136_v36 = vld [vmem:[%s837_s3 + $0x50] sm:$0xff]  ;;  %v137_v37 = vld [vmem:[%s837_s3 + $0x58] sm:$0xff]  ;;  %v566_v38 = vpack.c.bf16 %v45_v35, %v44_v34  ;;  %v46_v40 = vld [vmem:[%s835_s1 + $0x60] sm:$0xff] }
  0x1d   :  { %v528_v39 = vpack.c.bf16 %v137_v37, %v136_v36  ;;  %v47_v41 = vld [vmem:[%s835_s1 + $0x68] sm:$0xff]  ;;  %v138_v42 = vld [vmem:[%s837_s3 + $0x60] sm:$0xff]  ;;  %v48_v46 = vld [vmem:[%s835_s1 + $0x70] sm:$0xff] }
  0x1e   :  { %v139_v43 = vld [vmem:[%s837_s3 + $0x68] sm:$0xff]  ;;  %v570_v44 = vpack.c.bf16 %v47_v41, %v46_v40  ;;  %v49_v47 = vld [vmem:[%s835_s1 + $0x78] sm:$0xff]  ;;  %v140_v48 = vld [vmem:[%s837_s3 + $0x70] sm:$0xff]  ;;  %s635_s1 = smov [#allocation5]  }
  0x1f   :  { %v534_v45 = vpack.c.bf16 %v139_v43, %v138_v42  ;;  %v141_v49 = vld [vmem:[%s837_s3 + $0x78] sm:$0xff]  ;;  %v574_v50 = vpack.c.bf16 %v49_v47, %v48_v46  ;;  %s354_s3 = sshll.u32 %s635_s1, 4  ;;  %s355_s3 = int_to_ptr.vmem [resolvable:$true] %s354_s3 }
  0x20   :  { %v540_v51 = vpack.c.bf16 %v141_v49, %v140_v48  ;;  %s606_s15 = scalar_lea.vmem %s355_s3, 256  ;;  %p611_p9 = scmp.lt.s32.totalorder %s355_s3, %s355_s3 }
  0x21   :  { %553 = vmatpush3.bf16.xpose.msra.mxu1 %v550_v12  ;;  %p607_p8 = scmp.ne.s32.totalorder %s355_s3, %s606_s15  ;;  %p612_p10 = scmp.lt.s32.totalorder %s606_s15, %s606_s15 }
  0x22   :  { %509 = vmatpush3.bf16.xpose.msk.msra.mxu0 %vm678_vm1, %v504_v15  ;;  %555 = vmatprep.subr.bf16.mxu1 %v554_v20 }
  0x23   :  { %512 = vmatprep.subr.msk.bf16.mxu0 %vm678_vm1, %v510_v21  ;;  %p613_p11 = por %p612_p10, %p611_p9 }
  0x25   :  { %p614_p12 = pnand %p613_p11, %p607_p8 }
  0x29   :  { %557 = vmatpush3.bf16.xpose.msra.mxu1 %v554_v20 }
  0x2a   :  { %515 = vmatpush3.bf16.xpose.msk.msra.mxu0 %vm678_vm1, %v510_v21  ;;  %559 = vmatprep.subr.bf16.mxu1 %v558_v26 }
  0x2b   :  { %518 = vmatprep.subr.msk.bf16.mxu0 %vm678_vm1, %v516_v27 }
  0x31   :  { %561 = vmatpush3.bf16.xpose.msra.mxu1 %v558_v26 }
  0x32   :  { %521 = vmatpush3.bf16.xpose.msk.msra.mxu0 %vm678_vm1, %v516_v27  ;;  %563 = vmatprep.subr.bf16.mxu1 %v562_v32 }
  0x33   :  { %524 = vmatprep.subr.msk.bf16.mxu0 %vm678_vm1, %v522_v33 }
  0x39   :  { %565 = vmatpush3.bf16.xpose.msra.mxu1 %v562_v32 }
  0x3a   :  { %527 = vmatpush3.bf16.xpose.msk.msra.mxu0 %vm678_vm1, %v522_v33  ;;  %567 = vmatprep.subr.bf16.mxu1 %v566_v38 }
  0x3b   :  { %530 = vmatprep.subr.msk.bf16.mxu0 %vm678_vm1, %v528_v39 }
  0x41   :  { %569 = vmatpush3.bf16.xpose.msra.mxu1 %v566_v38 }
  0x42   :  { %533 = vmatpush3.bf16.xpose.msk.msra.mxu0 %vm678_vm1, %v528_v39  ;;  %571 = vmatprep.subr.bf16.mxu1 %v570_v44 }
  0x43   :  { %536 = vmatprep.subr.msk.bf16.mxu0 %vm678_vm1, %v534_v45 }
  0x49   :  { %573 = vmatpush3.bf16.xpose.msra.mxu1 %v570_v44 }
  0x4a   :  { %539 = vmatpush3.bf16.xpose.msk.msra.mxu0 %vm678_vm1, %v534_v45  ;;  %575 = vmatprep.subr.bf16.mxu1 %v574_v50 }
  0x4b   :  { %542 = vmatprep.subr.msk.bf16.mxu0 %vm678_vm1, %v540_v51 }
  0x51   :  { %577 = vmatpush3.bf16.xpose.msra.mxu1 %v574_v50 }
  0x52   :  { %545 = vmatpush3.bf16.xpose.msk.msra.mxu0 %vm678_vm1, %v540_v51 }
  0x58   :  { %496 = vmatmul.mubr.f32.vlgmr.msra.gmra.mrb[0].mxu1 %v685_v3 }
  0xeb   :  { %v427_v52 = vpop.f32.mrb[0].mxu0 }
  0xec   :  { %v117_v53 = vpop.f32.mrb[1].mxu0 }
  0xed   :  { %460 = vmatprep.mubr.msk.f32.mxu0 %vm142_vm0, %v117_v53 }
  0xee   :  { %461 = vmatmul.mubr.msk.f32.vlgmr.msra.gmra.mrb[2].mxu0 %vm142_vm0, %v427_v52 }
 0x12b   :  { %v497_v54 = vpop.f32.mrb[0].mxu1 }
 0x12c   :  { %v338_v55 = vpop.f32.mrb[1].mxu1 }
 0x1c1   :  { %v462_v56 = vpop.f32.mrb[2].mxu0 }
 0x1c2   :  { %v344_v57 = vadd.f32 %v497_v54, %v462_v56  ;;  %v263_v58 = vpop.f32.mrb[3].mxu0 }
 0x1c3   :  { %v339_v59 = vadd.f32 %v338_v55, %v263_v58 }
 0x1c4   :  { %348 = vst [vmem:[#allocation5 + $0x8] sm:$0xff] %v344_v57 }
 0x1c5   :  { %347 = vst [vmem:[#allocation5] sm:$0xff] %v339_v59 }
 0x1c6   :  { %617 = shalt.err (!%p614_p12)
}
 0x1c7   :  { %s618_s18 = scalar_lea.hbm %s838_s4, 256 }
 0x1c8   :  { %p619_p13 = scmp.ne.s32.totalorder %s838_s4, %s618_s18  ;;  %p622_p0 = scmp.lt.u32.totalorder %s618_s18, %s838_s4 }
 0x1ca   :  { %p624_p1 = pnand %p622_p0, %p619_p13 }
 0x1cc   :  { %627 = shalt.err (!%p624_p1)
}
 0x1cd   :  { %360 = dma.vmem_to_hbm [thread:$0]  %s355_s3, 256, %s838_s4, [#allocation4], %s633_s25, %s633_s25, %s634_s26  }
 0x1ce   :  { %630 = dma.done.wait [#allocation4], 256  }
 0x1cf   :  { %631 = vsyncadd [#allocation4], 4294967040 }
 0x1d0   :  { %364 = vsyncpa [#allocation3], 1 }
 0x1d1   :  { %365 = vsyncpa [#allocation4], 1 }

</bundles_post_ra>
